<compile_context>
chip_gen: v6e
topology: v6e:2x2x1
jax: 0.10.0
libtpu: 0.0.40
codegen_flags: <defaults>
</compile_context>

<pallas_src>
import jax
import jax.numpy as jnp
from jax.experimental import pallas as pl
from jax.experimental.pallas import tpu as pltpu

LANE = 128      # TPU lane width (last dim)
MAX_TB = 2048   # upper bound on batch-tile rows


def _round_up(x, m):
    return (x + m - 1) // m * m


# --------------------------------------------------------------------------
# Kernel: fused 3-layer MLP on one (tb, in_p) batch tile.
# Matmul operands are w*_ref.dtype (bf16 by default, MXU-native on all chips);
# accumulation, bias-add, ReLU and sigmoid are f32 (VPU/EUP friendly).
# --------------------------------------------------------------------------
def mlp_kernel(x_ref, w1_ref, b1_ref, w2_ref, b2_ref, w3_ref, b3_ref, o_ref):
    mm = w1_ref.dtype
    x = x_ref[...].astype(mm)                                   # on-chip cast

    h1 = jnp.dot(x, w1_ref[...], preferred_element_type=jnp.float32) + b1_ref[...]
    h1 = jnp.maximum(h1, 0.0)                                   # ReLU (f32)

    h2 = jnp.dot(h1.astype(mm), w2_ref[...],
                 preferred_element_type=jnp.float32) + b2_ref[...]
    h2 = jnp.maximum(h2, 0.0)                                   # ReLU (f32)

    z = jnp.dot(h2.astype(mm), w3_ref[...],
                preferred_element_type=jnp.float32) + b3_ref[...]
    o_ref[...] = jax.nn.sigmoid(z).astype(o_ref.dtype)          # Sigmoid (f32)


# --------------------------------------------------------------------------
# One-time layout plumbing (hoisted out of the per-call path).
# --------------------------------------------------------------------------
def prepare_params(params, *, matmul_dtype=jnp.bfloat16):
    """Transpose W to (in, out), reshape biases to (1, out), zero-pad hidden /
    output dims to 128 lanes (exact: padded units see zero weights & biases),
    and cast matmul operands to `matmul_dtype` (biases stay f32)."""
    w1 = params["w1"].T  # (in, h)
    w2 = params["w2"].T  # (h, h)
    w3 = params["w3"].T  # (h, out)
    in_size, hidden = w1.shape
    out_dim = w3.shape[1]

    in_p = _round_up(in_size, LANE)
    h_p = _round_up(hidden, LANE)
    o_p = _round_up(out_dim, LANE)

    w1p = jnp.zeros((in_p, h_p), jnp.float32).at[:in_size, :hidden].set(w1)
    w2p = jnp.zeros((h_p, h_p), jnp.float32).at[:hidden, :hidden].set(w2)
    w3p = jnp.zeros((h_p, o_p), jnp.float32).at[:hidden, :out_dim].set(w3)
    b1p = jnp.zeros((1, h_p), jnp.float32).at[0, :hidden].set(params["b1"])
    b2p = jnp.zeros((1, h_p), jnp.float32).at[0, :hidden].set(params["b2"])
    b3p = jnp.zeros((1, o_p), jnp.float32).at[0, :out_dim].set(params["b3"])

    return {
        "w1": w1p.astype(matmul_dtype),
        "w2": w2p.astype(matmul_dtype),
        "w3": w3p.astype(matmul_dtype),
        "b1": b1p, "b2": b2p, "b3": b3p,
        "in_size": in_size, "in_padded": in_p,
        "hidden_padded": h_p,
        "out_dim": out_dim, "out_padded": o_p,
        "matmul_dtype": matmul_dtype,
        "out_dtype": matmul_dtype,   # f32 path -> exact; bf16 path -> half writeback
    }


def _vmem_limit_bytes():
    """Chip-aware scoped-VMEM limit (v7x has only 64 MiB physical)."""
    try:
        cap = int(pltpu.get_tpu_info().vmem_capacity_bytes)
    except Exception:
        cap = 64 << 20            # conservative (v7x) fallback
    return max(32 << 20, min(int(cap * 0.9), 112 << 20))


def _choose_tile(b, in_p, h_p, o_p, x_itemsize, mm_itemsize, out_itemsize,
                 vmem_limit, granule):
    """Largest batch tile that fits ~75% of the VMEM limit, multiple of the
    sublane granule, capped so the grid keeps >= 2 steps when b allows
    (v7x: shards across its 2 TensorCores)."""
    per_row = (2 * in_p * x_itemsize        # double-buffered x tile
               + 2 * o_p * out_itemsize     # double-buffered output tile
               + in_p * mm_itemsize         # in-kernel cast copy of the x tile
               + 4 * h_p * 4)               # f32 h1/h2/z temporaries (generous)
    resident = ((in_p * h_p + h_p * h_p + h_p * o_p) * mm_itemsize
                + (2 * h_p + o_p) * 4) * 2  # weights/biases (double-buffered)
    budget = int(0.75 * vmem_limit) - resident
    tb = max(granule, (budget // per_row) // granule * granule)
    tb = min(tb, MAX_TB)
    if b > granule:                          # keep >= 2 grid steps if possible
        tb = min(tb, _round_up((b + 1) // 2, granule))
    if tb >= b:
        tb = b                               # single tile == full array (layout exemption)
    return tb


# --------------------------------------------------------------------------
# Wrapper: nn.Flatten (glue) + batch-tiled pallas_call.
# --------------------------------------------------------------------------
def mlp_forward(x, prep):
    b = x.shape[0]
    in_size, in_p = prep["in_size"], prep["in_padded"]
    h_p, o_p, out_dim = prep["hidden_padded"], prep["out_padded"], prep["out_dim"]
    mm_dtype = prep["matmul_dtype"]
    out_dtype = prep["out_dtype"]

    # Flatten is a metadata-only reshape; x is NOT cast or batch-padded in the
    # wrapper (no extra HBM copies of the activation stream).
    x2d = x.reshape(b, -1)
    if in_p != in_size:
        # Only copy needed: feature dim not a lane multiple (not hit when
        # in_size % 128 == 0, as in the demo).
        x2d = jnp.pad(x2d, ((0, 0), (0, in_p - in_size)))

    mm_itemsize = jnp.dtype(mm_dtype).itemsize
    out_itemsize = jnp.dtype(out_dtype).itemsize
    granule = {4: 8, 2: 16, 1: 32}[mm_itemsize]   # sublane granule per operand width

    vmem_limit = _vmem_limit_bytes()
    tb = _choose_tile(b, in_p, h_p, o_p, x2d.dtype.itemsize, mm_itemsize,
                      out_itemsize, vmem_limit, granule)
    grid = (pl.cdiv(b, tb),)   # ragged final tile only feeds discarded rows

    w_bytes = sum(prep[k].size * prep[k].dtype.itemsize
                  for k in ("w1", "w2", "w3", "b1", "b2", "b3"))
    cost = pl.CostEstimate(
        flops=2 * b * (in_p * h_p + h_p * h_p + h_p * o_p),
        transcendentals=b * o_p,
        bytes_accessed=(x2d.size * x2d.dtype.itemsize + w_bytes
                        + b * o_p * out_itemsize),
    )

    out = pl.pallas_call(
        mlp_kernel,
        out_shape=jax.ShapeDtypeStruct((b, o_p), out_dtype),
        grid=grid,
        in_specs=[
            pl.BlockSpec((tb, in_p), lambda i: (i, 0)),    # x tile (pipelined)
            pl.BlockSpec((in_p, h_p), lambda i: (0, 0)),   # W1 (resident)
            pl.BlockSpec((1, h_p), lambda i: (0, 0)),      # b1
            pl.BlockSpec((h_p, h_p), lambda i: (0, 0)),    # W2
            pl.BlockSpec((1, h_p), lambda i: (0, 0)),      # b2
            pl.BlockSpec((h_p, o_p), lambda i: (0, 0)),    # W3
            pl.BlockSpec((1, o_p), lambda i: (0, 0)),      # b3
        ],
        out_specs=pl.BlockSpec((tb, o_p), lambda i: (i, 0)),  # lane-dense tile
        compiler_params=pltpu.CompilerParams(
            dimension_semantics=("parallel",),
            vmem_limit_bytes=vmem_limit,
        ),
        cost_estimate=cost,
    )(x2d, prep["w1"], prep["b1"], prep["w2"], prep["b2"], prep["w3"], prep["b3"])

    return out[:b, :out_dim].astype(jnp.float32)


# --------------------------------------------------------------------------
# Init + pure-JAX reference (PyTorch forward semantics, f32 weights).
# --------------------------------------------------------------------------
def init_params(key, input_size, hidden, out_dim=1):
    """Deterministic init mimicking nn.Linear default (uniform +-1/sqrt(fan_in))."""
    ks = jax.random.split(key, 6)

    def uni(k, shape, fan_in):
        bound = 1.0 / jnp.sqrt(float(fan_in))
        return jax.random.uniform(k, shape, jnp.float32, -bound, bound)

    return {
        "w1": uni(ks[0], (hidden, input_size), input_size),
        "b1": uni(ks[1], (hidden,), input_size),
        "w2": uni(ks[2], (hidden, hidden), hidden),
        "b2": uni(ks[3], (hidden,), hidden),
        "w3": uni(ks[4], (out_dim, hidden), hidden),
        "b3": uni(ks[5], (out_dim,), hidden),
    }


def reference_forward(x_nchw, params):
    x = x_nchw.reshape(x_nchw.shape[0], -1).astype(jnp.float32)
    h = jnp.maximum(x @ params["w1"].T + params["b1"], 0.0)
    h = jnp.maximum(h @ params["w2"].T + params["b2"], 0.0)
    return jax.nn.sigmoid(h @ params["w3"].T + params["b3"])


if __name__ == "__main__":
    # Small shapes consistent with forward(): NCHW input, flattened internally.
    B, C, H, W = 2, 4, 16, 16
    input_size = C * H * W          # 1024
    hidden = 32

    key = jax.random.PRNGKey(0)
    kx, kp, kx2 = jax.random.split(key, 3)
    x = jax.random.normal(kx, (B, C, H, W), dtype=jnp.float32)
    params = init_params(kp, input_size, hidden)
    ref = reference_forward(x, params)

    # f32-operand path: matches the pure-JAX reference tightly.
    prep_f32 = prepare_params(params, matmul_dtype=jnp.float32)
    out_f32 = jax.block_until_ready(mlp_forward(x, prep_f32))
    assert out_f32.shape == (B, 1)
    assert jnp.allclose(out_f32, ref, atol=1e-5, rtol=1e-5), "f32 mismatch vs reference"

    # bf16-operand / f32-accumulate path (default; MXU-native on v5e/v6e/v7x).
    prep_bf16 = prepare_params(params)
    out_bf16 = jax.block_until_ready(mlp_forward(x, prep_bf16))
    assert out_bf16.shape == (B, 1)
    assert jnp.allclose(out_bf16, ref, atol=2e-2, rtol=0), "bf16 mismatch vs reference"

    # Multi-tile path: grid >= 2 (exercises pipelining + megacore sharding).
    B2 = 96
    x2 = jax.random.normal(kx2, (B2, C, H, W), dtype=jnp.float32)
    ref2 = reference_forward(x2, params)
    out2 = jax.block_until_ready(mlp_forward(x2, prep_bf16))
    assert out2.shape == (B2, 1)
    assert jnp.allclose(out2, ref2, atol=2e-2, rtol=0), "multi-tile mismatch vs reference"

    print("KERNEL_OK")
</pallas_src>

<mosaic_0001>
module attributes {stable_mosaic.version = 11 : i64} {
  func.func @mlp_kernel(%arg0: i32, %arg1: memref<2x1024xf32, #tpu.memory_space<vmem>>, %arg2: memref<1024x128xf32, #tpu.memory_space<vmem>>, %arg3: memref<1x128xf32, #tpu.memory_space<vmem>>, %arg4: memref<128x128xf32, #tpu.memory_space<vmem>>, %arg5: memref<1x128xf32, #tpu.memory_space<vmem>>, %arg6: memref<128x128xf32, #tpu.memory_space<vmem>>, %arg7: memref<1x128xf32, #tpu.memory_space<vmem>>, %arg8: memref<2x128xf32, #tpu.memory_space<vmem>>) attributes {dimension_semantics = [#tpu.dimension_semantics<parallel>], iteration_bounds = array<i64: 1>, scalar_prefetch = 0 : i64, scratch_operands = 0 : i64, tpu.core_type = #tpu.core_type<tc>, window_params = [{transform_indices = @transform_0, window_bounds = array<i64: 2, 1024>}, {pipeline_mode = #tpu.pipeline_mode<synchronous>, transform_indices = @transform_1, window_bounds = array<i64: 1024, 128>}, {pipeline_mode = #tpu.pipeline_mode<synchronous>, transform_indices = @transform_2, window_bounds = array<i64: 1, 128>}, {pipeline_mode = #tpu.pipeline_mode<synchronous>, transform_indices = @transform_3, window_bounds = array<i64: 128, 128>}, {pipeline_mode = #tpu.pipeline_mode<synchronous>, transform_indices = @transform_4, window_bounds = array<i64: 1, 128>}, {pipeline_mode = #tpu.pipeline_mode<synchronous>, transform_indices = @transform_5, window_bounds = array<i64: 128, 128>}, {pipeline_mode = #tpu.pipeline_mode<synchronous>, transform_indices = @transform_6, window_bounds = array<i64: 1, 128>}, {transform_indices = @transform_7, window_bounds = array<i64: 2, 128>}]} {
    %c0 = arith.constant 0 : index
    %c0_0 = arith.constant 0 : index
    %0 = vector.load %arg1[%c0, %c0_0] : memref<2x1024xf32, #tpu.memory_space<vmem>>, vector<2x1024xf32>
    %c0_1 = arith.constant 0 : index
    %c0_2 = arith.constant 0 : index
    %1 = vector.load %arg2[%c0_1, %c0_2] : memref<1024x128xf32, #tpu.memory_space<vmem>>, vector<1024x128xf32>
    %cst = arith.constant dense<0.000000e+00> : vector<2x128xf32>
    %2 = tpu.matmul %0, %1, %cst {dimension_numbers = #tpu.dot_dimension_numbers<[1], [0], [0], [1], [0, 0, 1, 1], [], []>} : vector<2x1024xf32>, vector<1024x128xf32>, vector<2x128xf32> -> vector<2x128xf32>
    %c0_3 = arith.constant 0 : index
    %c0_4 = arith.constant 0 : index
    %3 = vector.load %arg3[%c0_3, %c0_4] : memref<1x128xf32, #tpu.memory_space<vmem>>, vector<1x128xf32>
    %4 = vector.broadcast %3 : vector<1x128xf32> to vector<2x128xf32>
    %5 = arith.addf %2, %4 : vector<2x128xf32>
    %cst_5 = arith.constant 0.000000e+00 : f32
    %6 = vector.broadcast %cst_5 : f32 to vector<2x128xf32>
    %7 = arith.maximumf %5, %6 : vector<2x128xf32>
    %c0_6 = arith.constant 0 : index
    %c0_7 = arith.constant 0 : index
    %8 = vector.load %arg4[%c0_6, %c0_7] : memref<128x128xf32, #tpu.memory_space<vmem>>, vector<128x128xf32>
    %cst_8 = arith.constant dense<0.000000e+00> : vector<2x128xf32>
    %9 = tpu.matmul %7, %8, %cst_8 {dimension_numbers = #tpu.dot_dimension_numbers<[1], [0], [0], [1], [0, 0, 1, 1], [], []>} : vector<2x128xf32>, vector<128x128xf32>, vector<2x128xf32> -> vector<2x128xf32>
    %c0_9 = arith.constant 0 : index
    %c0_10 = arith.constant 0 : index
    %10 = vector.load %arg5[%c0_9, %c0_10] : memref<1x128xf32, #tpu.memory_space<vmem>>, vector<1x128xf32>
    %11 = vector.broadcast %10 : vector<1x128xf32> to vector<2x128xf32>
    %12 = arith.addf %9, %11 : vector<2x128xf32>
    %cst_11 = arith.constant 0.000000e+00 : f32
    %13 = vector.broadcast %cst_11 : f32 to vector<2x128xf32>
    %14 = arith.maximumf %12, %13 : vector<2x128xf32>
    %c0_12 = arith.constant 0 : index
    %c0_13 = arith.constant 0 : index
    %15 = vector.load %arg6[%c0_12, %c0_13] : memref<128x128xf32, #tpu.memory_space<vmem>>, vector<128x128xf32>
    %cst_14 = arith.constant dense<0.000000e+00> : vector<2x128xf32>
    %16 = tpu.matmul %14, %15, %cst_14 {dimension_numbers = #tpu.dot_dimension_numbers<[1], [0], [0], [1], [0, 0, 1, 1], [], []>} : vector<2x128xf32>, vector<128x128xf32>, vector<2x128xf32> -> vector<2x128xf32>
    %c0_15 = arith.constant 0 : index
    %c0_16 = arith.constant 0 : index
    %17 = vector.load %arg7[%c0_15, %c0_16] : memref<1x128xf32, #tpu.memory_space<vmem>>, vector<1x128xf32>
    %18 = vector.broadcast %17 : vector<1x128xf32> to vector<2x128xf32>
    %19 = arith.addf %16, %18 : vector<2x128xf32>
    %20 = arith.negf %19 : vector<2x128xf32>
    %21 = math.exp %20 : vector<2x128xf32>
    %cst_17 = arith.constant 1.000000e+00 : f32
    %22 = vector.broadcast %cst_17 : f32 to vector<2x128xf32>
    %23 = arith.addf %22, %21 : vector<2x128xf32>
    %24 = arith.divf %22, %23 : vector<2x128xf32>
    %c0_18 = arith.constant 0 : index
    %c0_19 = arith.constant 0 : index
    %25 = vector.load %arg8[%c0_18, %c0_19] : memref<2x128xf32, #tpu.memory_space<vmem>>, vector<2x128xf32>
    tpu.vector_store %arg8[%c0_18, %c0_19], %24 {strides = array<i32>} : memref<2x128xf32, #tpu.memory_space<vmem>>, vector<2x128xf32>,
    return
  }
  func.func @transform_0(%arg0: i32) -> (i32, i32) {
    %c0_i32 = arith.constant 0 : i32
    %c0_i32_0 = arith.constant 0 : i32
    return %arg0, %c0_i32 : i32, i32
  }
  func.func @transform_1(%arg0: i32) -> (i32, i32) {
    %c0_i32 = arith.constant 0 : i32
    %c0_i32_0 = arith.constant 0 : i32
    %c0_i32_1 = arith.constant 0 : i32
    return %c0_i32, %c0_i32_0 : i32, i32
  }
  func.func @transform_2(%arg0: i32) -> (i32, i32) {
    %c0_i32 = arith.constant 0 : i32
    %c0_i32_0 = arith.constant 0 : i32
    %c0_i32_1 = arith.constant 0 : i32
    return %c0_i32, %c0_i32_0 : i32, i32
  }
  func.func @transform_3(%arg0: i32) -> (i32, i32) {
    %c0_i32 = arith.constant 0 : i32
    %c0_i32_0 = arith.constant 0 : i32
    %c0_i32_1 = arith.constant 0 : i32
    return %c0_i32, %c0_i32_0 : i32, i32
  }
  func.func @transform_4(%arg0: i32) -> (i32, i32) {
    %c0_i32 = arith.constant 0 : i32
    %c0_i32_0 = arith.constant 0 : i32
    %c0_i32_1 = arith.constant 0 : i32
    return %c0_i32, %c0_i32_0 : i32, i32
  }
  func.func @transform_5(%arg0: i32) -> (i32, i32) {
    %c0_i32 = arith.constant 0 : i32
    %c0_i32_0 = arith.constant 0 : i32
    %c0_i32_1 = arith.constant 0 : i32
    return %c0_i32, %c0_i32_0 : i32, i32
  }
  func.func @transform_6(%arg0: i32) -> (i32, i32) {
    %c0_i32 = arith.constant 0 : i32
    %c0_i32_0 = arith.constant 0 : i32
    %c0_i32_1 = arith.constant 0 : i32
    return %c0_i32, %c0_i32_0 : i32, i32
  }
  func.func @transform_7(%arg0: i32) -> (i32, i32) {
    %c0_i32 = arith.constant 0 : i32
    %c0_i32_0 = arith.constant 0 : i32
    return %arg0, %c0_i32 : i32, i32
  }
}

</mosaic_0001>

<bundles_post_ra>
// kernel: tpu_custom_call.1
= control target key start
LH: loop header
LB: loop body
LE: loop exit
PB: predicated region body
PF: predicated region fallthrough
CT: control target
= control target key end

     0   :  { %12 = vsyncpa [#allocation3], 0  ;;  %s1248_s0 = inlined_call_operand.hbm [shape: f32[2,1024], index: 0, kind: input, shape index: {}]   ;;  %s1249_s1 = inlined_call_operand.hbm [shape: f32[1024,128], index: 1, kind: input, shape index: {}]   ;;  %s1250_s2 = inlined_call_operand.vmem [shape: f32[1,128], index: 2, kind: input, shape index: {}]   ;;  %s1251_s3 = inlined_call_operand.hbm [shape: f32[128,128], index: 3, kind: input, shape index: {}]   ;;  %s1252_s4 = inlined_call_operand.vmem [shape: f32[1,128], index: 4, kind: input, shape index: {}]   ;;  %s1253_s5 = inlined_call_operand.hbm [shape: f32[128,128], index: 5, kind: input, shape index: {}]   ;;  %s1254_s6 = inlined_call_operand.vmem [shape: f32[1,128], index: 6, kind: input, shape index: {}]   ;;  %s1255_s7 = inlined_call_operand.hbm [shape: f32[2,128], index: 7, kind: output, shape index: {}]  }
   0x1   :  { %13 = vsyncpa [#allocation6], 0 }
   0x2   :  { %14 = vsyncpa [#allocation9], 0 }
   0x3   :  { %15 = vsyncpa [#allocation4], 0  ;;  %s1125_s24 = smov [#allocation5]  }
   0x4   :  { %s31_s25 = sshll.u32 %s1125_s24, 4  ;;  %s32_s25 = int_to_ptr.vmem [resolvable:$true] %s31_s25 }
   0x5   :  { %s1025_s26 = scalar_lea.vmem %s32_s25, 16384  ;;  %p1030_p1 = scmp.lt.s32.totalorder %s32_s25, %s32_s25 }
   0x6   :  { %p1026_p0 = scmp.ne.s32.totalorder %s32_s25, %s1025_s26  ;;  %p1031_p2 = scmp.lt.s32.totalorder %s1025_s26, %s1025_s26 }
   0x8   :  { %p1032_p3 = por %p1031_p2, %p1030_p1 }
   0xa   :  { %p1033_p4 = pnand %p1032_p3, %p1026_p0 }
   0xc   :  { %1036 = shalt.err (!%p1033_p4)
}
   0xd   :  { %s1126_s27 = smov 128   ;;  %s1127_s28 = smov 8  }
   0xe   :  { %37 = dma.hbm_to_vmem [thread:$0]  %s1249_s1, 16384, %s32_s25, [#allocation6], %s1126_s27, %s1126_s27, %s1127_s28  }
   0xf   :  { %s1128_s8 = smov [#allocation2]   ;;  %s1129_s10 = smov [#allocation7]  }
  0x10   :  { %s22_s9 = sshll.u32 %s1128_s8, 4  ;;  %s45_s11 = sshll.u32 %s1129_s10, 4  ;;  %s23_s9 = int_to_ptr.vmem [resolvable:$true] %s22_s9  ;;  %s46_s11 = int_to_ptr.vmem [resolvable:$true] %s45_s11 }
  0x11   :  { %s1045_s12 = scalar_lea.vmem %s23_s9, 256  ;;  %p1050_p6 = scmp.lt.s32.totalorder %s23_s9, %s23_s9 }
  0x12   :  { %p1046_p5 = scmp.ne.s32.totalorder %s23_s9, %s1045_s12  ;;  %p1051_p7 = scmp.lt.s32.totalorder %s1045_s12, %s1045_s12 }
  0x14   :  { %p1052_p8 = por %p1051_p7, %p1050_p6 }
  0x16   :  { %p1053_p9 = pnand %p1052_p8, %p1046_p5 }
  0x18   :  { %1056 = shalt.err (!%p1053_p9)
}
  0x19   :  { %25 = dma.hbm_to_vmem [thread:$0]  %s1248_s0, 256, %s23_s9, [#allocation3]  }
  0x1a   :  { %s1065_s15 = scalar_lea.vmem %s46_s11, 2048  ;;  %p1070_p11 = scmp.lt.s32.totalorder %s46_s11, %s46_s11 }
  0x1b   :  { %p1066_p10 = scmp.ne.s32.totalorder %s46_s11, %s1065_s15  ;;  %p1071_p12 = scmp.lt.s32.totalorder %s1065_s15, %s1065_s15 }
  0x1d   :  { %p1072_p13 = por %p1071_p12, %p1070_p11 }
  0x1f   :  { %p1073_p0 = pnand %p1072_p13, %p1066_p10 }
  0x21   :  { %1076 = shalt.err (!%p1073_p0)
}
  0x22   :  { %51 = dma.hbm_to_vmem [thread:$0]  %s1251_s3, 2048, %s46_s11, [#allocation6], %s1126_s27, %s1126_s27, %s1127_s28  }
  0x23   :  { %s1130_s17 = smov [#allocation8]  }
  0x24   :  { %s59_s18 = sshll.u32 %s1130_s17, 4  ;;  %s60_s18 = int_to_ptr.vmem [resolvable:$true] %s59_s18 }
  0x25   :  { %s1085_s19 = scalar_lea.vmem %s60_s18, 2048  ;;  %p1090_p2 = scmp.lt.s32.totalorder %s60_s18, %s60_s18 }
  0x26   :  { %p1086_p1 = scmp.ne.s32.totalorder %s60_s18, %s1085_s19  ;;  %p1091_p3 = scmp.lt.s32.totalorder %s1085_s19, %s1085_s19 }
  0x28   :  { %p1092_p4 = por %p1091_p3, %p1090_p2 }
  0x2a   :  { %p1093_p5 = pnand %p1092_p4, %p1086_p1 }
  0x2c   :  { %1096 = shalt.err (!%p1093_p5)
}
  0x2d   :  { %65 = dma.hbm_to_vmem [thread:$0]  %s1253_s5, 2048, %s60_s18, [#allocation9], %s1126_s27, %s1126_s27, %s1127_s28  }
  0x2e   :  { %1117 = dma.done.wait [#allocation3], 256  }
  0x2f   :  { %1118 = vsyncadd [#allocation3], 4294967040 }
  0x30   :  { %1119 = dma.done.wait [#allocation6], 18432  }
  0x31   :  { %1120 = vsyncadd [#allocation6], 4294948864 }
  0x32   :  { %1121 = dma.done.wait [#allocation9], 2048  }
  0x33   :  { %1122 = vsyncadd [#allocation9], 4294965248  ;;  %v113_v0 = vld [vmem:[#allocation5 + $0xf8] sm:$0xff]  ;;  %v112_v4 = vld [vmem:[#allocation5 + $0xf0] sm:$0xff]  ;;  %v1131_v30 = vmov 1983009808   ;;  %v223_v32 = vlaneseq }
  0x34   :  { %v145_v1 = vld [vmem:[#allocation5 + $0x1f8] sm:$0xff]  ;;  %757 = vmatprep.subr.mxu0 %v113_v0  ;;  %v144_v5 = vld [vmem:[#allocation5 + $0x1f0] sm:$0xff]  ;;  %v111_v8 = vld [vmem:[#allocation5 + $0xe8] sm:$0xff]  ;;  %v221_v31 = vunpack.c.l.s4 %v1131_v30  ;;  %vm1133_vm0 = vmmov 0   ;;  %s1134_s24 = smov [#allocation10]  }
  0x35   :  { %v97_v2 = vld [vmem:[#allocation5 + $0x78] sm:$0xff]  ;;  %792 = vmatprep.subr.mxu1 %v145_v1  ;;  %v96_v6 = vld [vmem:[#allocation5 + $0x70] sm:$0xff]  ;;  %v143_v9 = vld [vmem:[#allocation5 + $0x1e8] sm:$0xff]  ;;  %v224_v42 = vshrl.u32 %v223_v32, 7  ;;  %s742_s25 = sshll.u32 %s1134_s24, 4  ;;  %s743_s25 = int_to_ptr.vmem [resolvable:$true] %s742_s25 }
  0x36   :  { %v129_v3 = vld [vmem:[#allocation5 + $0x178] sm:$0xff]  ;;  %758 = vmatpush3.msra.mxu0 %v97_v2  ;;  %v128_v7 = vld [vmem:[#allocation5 + $0x170] sm:$0xff]  ;;  %v95_v10 = vld [vmem:[#allocation5 + $0x68] sm:$0xff]  ;;  %v222_v41 = vunpack.c.0.s8 %v221_v31  ;;  %p1102_p7 = scmp.lt.s32.totalorder %s743_s25, %s743_s25 }
  0x37   :  { %793 = vmatpush3.msra.mxu1 %v129_v3  ;;  %759 = vmatprep.subr.mxu0 %v112_v4  ;;  %v127_v11 = vld [vmem:[#allocation5 + $0x168] sm:$0xff]  ;;  %v110_v12 = vld [vmem:[#allocation5 + $0xe0] sm:$0xff]  ;;  %v109_v16 = vld [vmem:[#allocation5 + $0xd8] sm:$0xff] }
  0x38   :  { %794 = vmatprep.subr.mxu1 %v144_v5  ;;  %760 = vmatpush3.msra.mxu0 %v96_v6  ;;  %v142_v13 = vld [vmem:[#allocation5 + $0x1e0] sm:$0xff]  ;;  %v141_v17 = vld [vmem:[#allocation5 + $0x1d8] sm:$0xff]  ;;  %v108_v20 = vld [vmem:[#allocation5 + $0xd0] sm:$0xff]  ;;  %v1196_v51 = vsub.s32 %v222_v41, %v224_v42 }
  0x39   :  { %795 = vmatpush3.msra.mxu1 %v128_v7  ;;  %761 = vmatprep.subr.mxu0 %v111_v8  ;;  %v94_v14 = vld [vmem:[#allocation5 + $0x60] sm:$0xff]  ;;  %v93_v18 = vld [vmem:[#allocation5 + $0x58] sm:$0xff]  ;;  %v140_v21 = vld [vmem:[#allocation5 + $0x1d0] sm:$0xff] }
  0x3a   :  { %796 = vmatprep.subr.mxu1 %v143_v9  ;;  %v126_v15 = vld [vmem:[#allocation5 + $0x160] sm:$0xff]  ;;  %762 = vmatpush3.msra.mxu0 %v95_v10  ;;  %v125_v19 = vld [vmem:[#allocation5 + $0x158] sm:$0xff]  ;;  %v92_v22 = vld [vmem:[#allocation5 + $0x50] sm:$0xff] }
  0x3b   :  { %797 = vmatpush3.msra.mxu1 %v127_v11  ;;  %763 = vmatprep.subr.mxu0 %v110_v12  ;;  %v124_v23 = vld [vmem:[#allocation5 + $0x150] sm:$0xff]  ;;  %v107_v24 = vld [vmem:[#allocation5 + $0xc8] sm:$0xff]  ;;  %v106_v28 = vld [vmem:[#allocation5 + $0xc0] sm:$0xff] }
  0x3c   :  { %798 = vmatprep.subr.mxu1 %v142_v13  ;;  %764 = vmatpush3.msra.mxu0 %v94_v14  ;;  %v139_v25 = vld [vmem:[#allocation5 + $0x1c8] sm:$0xff]  ;;  %v138_v29 = vld [vmem:[#allocation5 + $0x1c0] sm:$0xff]  ;;  %v105_v35 = vld [vmem:[#allocation5 + $0xb8] sm:$0xff] }
  0x3d   :  { %799 = vmatpush3.msra.mxu1 %v126_v15  ;;  %765 = vmatprep.subr.mxu0 %v109_v16  ;;  %v91_v26 = vld [vmem:[#allocation5 + $0x48] sm:$0xff]  ;;  %v90_v33 = vld [vmem:[#allocation5 + $0x40] sm:$0xff]  ;;  %v137_v36 = vld [vmem:[#allocation5 + $0x1b8] sm:$0xff] }
  0x3e   :  { %800 = vmatprep.subr.mxu1 %v141_v17  ;;  %766 = vmatpush3.msra.mxu0 %v93_v18  ;;  %v123_v27 = vld [vmem:[#allocation5 + $0x148] sm:$0xff]  ;;  %v122_v34 = vld [vmem:[#allocation5 + $0x140] sm:$0xff]  ;;  %v89_v37 = vld [vmem:[#allocation5 + $0x38] sm:$0xff] }
  0x3f   :  { %801 = vmatpush3.msra.mxu1 %v125_v19  ;;  %767 = vmatprep.subr.mxu0 %v108_v20  ;;  %v121_v38 = vld [vmem:[#allocation5 + $0x138] sm:$0xff]  ;;  %v104_v39 = vld [vmem:[#allocation5 + $0xb0] sm:$0xff]  ;;  %v103_v45 = vld [vmem:[#allocation5 + $0xa8] sm:$0xff] }
  0x40   :  { %802 = vmatprep.subr.mxu1 %v140_v21  ;;  %768 = vmatpush3.msra.mxu0 %v92_v22  ;;  %v136_v40 = vld [vmem:[#allocation5 + $0x1b0] sm:$0xff]  ;;  %v135_v46 = vld [vmem:[#allocation5 + $0x1a8] sm:$0xff]  ;;  %v102_v49 = vld [vmem:[#allocation5 + $0xa0] sm:$0xff] }
  0x41   :  { %803 = vmatpush3.msra.mxu1 %v124_v23  ;;  %769 = vmatprep.subr.mxu0 %v107_v24  ;;  %v88_v43 = vld [vmem:[#allocation5 + $0x30] sm:$0xff]  ;;  %v87_v47 = vld [vmem:[#allocation5 + $0x28] sm:$0xff]  ;;  %v134_v50 = vld [vmem:[#allocation5 + $0x1a0] sm:$0xff] }
  0x42   :  { %804 = vmatprep.subr.mxu1 %v139_v25  ;;  %770 = vmatpush3.msra.mxu0 %v91_v26  ;;  %v120_v44 = vld [vmem:[#allocation5 + $0x130] sm:$0xff]  ;;  %v119_v48 = vld [vmem:[#allocation5 + $0x128] sm:$0xff]  ;;  %v86_v52 = vld [vmem:[#allocation5 + $0x20] sm:$0xff] }
  0x43   :  { %805 = vmatpush3.msra.mxu1 %v123_v27  ;;  %771 = vmatprep.subr.mxu0 %v106_v28  ;;  %v118_v53 = vld [vmem:[#allocation5 + $0x120] sm:$0xff]  ;;  %v80_v54 = vld [vmem:[#allocation2] sm:$0xff]  ;;  %v101_v55 = vld [vmem:[#allocation5 + $0x98] sm:$0xff] }
  0x44   :  { %806 = vmatprep.subr.mxu1 %v138_v29  ;;  %772 = vmatpush3.msra.mxu0 %v90_v33  ;;  %v133_v56 = vld [vmem:[#allocation5 + $0x198] sm:$0xff]  ;;  %v219_v57 = vcombine.high %v80_v54, %v80_v54  ;;  %v100_v60 = vld [vmem:[#allocation5 + $0x90] sm:$0xff]  ;;  %v226_v62 = vrot.slane %v80_v54, %v1196_v51  ;;  %v99_v1 = vld [vmem:[#allocation5 + $0x88] sm:$0xff] }
  0x45   :  { %807 = vmatpush3.msra.mxu1 %v122_v34  ;;  %773 = vmatprep.subr.mxu0 %v105_v35  ;;  %v85_v58 = vld [vmem:[#allocation5 + $0x18] sm:$0xff]  ;;  %v132_v61 = vld [vmem:[#allocation5 + $0x190] sm:$0xff]  ;;  %v131_v2 = vld [vmem:[#allocation5 + $0x188] sm:$0xff] }
  0x46   :  { %808 = vmatprep.subr.mxu1 %v137_v36  ;;  %774 = vmatpush3.msra.mxu0 %v89_v37  ;;  %v117_v59 = vld [vmem:[#allocation5 + $0x118] sm:$0xff]  ;;  %v84_v63 = vld [vmem:[#allocation5 + $0x10] sm:$0xff]  ;;  %v233_v3 = vrot.slane %v219_v57, %v1196_v51  ;;  %v83_v4 = vld [vmem:[#allocation5 + $0x8] sm:$0xff]  ;;  %v234_v8 = vcombine.high %v226_v62, %v226_v62 }
  0x47   :  { %809 = vmatpush3.msra.mxu1 %v121_v38  ;;  %775 = vmatprep.subr.mxu0 %v104_v39  ;;  %v116_v0 = vld [vmem:[#allocation5 + $0x110] sm:$0xff]  ;;  %v115_v5 = vld [vmem:[#allocation5 + $0x108] sm:$0xff]  ;;  %v98_v6 = vld [vmem:[#allocation5 + $0x80] sm:$0xff] }
  0x48   :  { %810 = vmatprep.subr.mxu1 %v136_v40  ;;  %776 = vmatpush3.msra.mxu0 %v88_v43  ;;  %v130_v7 = vld [vmem:[#allocation5 + $0x180] sm:$0xff]  ;;  %v235_v11 = vcombine.high %v233_v3, %v233_v3  ;;  %v177_v12 = vld [vmem:[#allocation5 + $0x2f8] sm:$0xff]  ;;  %v176_v16 = vld [vmem:[#allocation5 + $0x2f0] sm:$0xff] }
  0x49   :  { %811 = vmatpush3.msra.mxu1 %v120_v44  ;;  %777 = vmatprep.subr.mxu0 %v103_v45  ;;  %v82_v9 = vld [vmem:[#allocation5] sm:$0xff]  ;;  %v209_v13 = vld [vmem:[#allocation5 + $0x3f8] sm:$0xff]  ;;  %v208_v17 = vld [vmem:[#allocation5 + $0x3f0] sm:$0xff] }
  0x4a   :  { %812 = vmatprep.subr.mxu1 %v135_v46  ;;  %778 = vmatpush3.msra.mxu0 %v87_v47  ;;  %v114_v10 = vld [vmem:[#allocation5 + $0x100] sm:$0xff]  ;;  %v161_v14 = vld [vmem:[#allocation5 + $0x278] sm:$0xff]  ;;  %v160_v18 = vld [vmem:[#allocation5 + $0x270] sm:$0xff] }
  0x4b   :  { %813 = vmatpush3.msra.mxu1 %v119_v48  ;;  %779 = vmatprep.subr.mxu0 %v102_v49  ;;  %v193_v15 = vld [vmem:[#allocation5 + $0x378] sm:$0xff]  ;;  %v192_v19 = vld [vmem:[#allocation5 + $0x370] sm:$0xff]  ;;  %v175_v20 = vld [vmem:[#allocation5 + $0x2e8] sm:$0xff] }
  0x4c   :  { %814 = vmatprep.subr.mxu1 %v134_v50  ;;  %780 = vmatpush3.msra.mxu0 %v86_v52  ;;  %v207_v21 = vld [vmem:[#allocation5 + $0x3e8] sm:$0xff]  ;;  %v174_v24 = vld [vmem:[#allocation5 + $0x2e0] sm:$0xff]  ;;  %v173_v28 = vld [vmem:[#allocation5 + $0x2d8] sm:$0xff] }
  0x4d   :  { %815 = vmatpush3.msra.mxu1 %v118_v53  ;;  %781 = vmatprep.subr.mxu0 %v101_v55  ;;  %v159_v22 = vld [vmem:[#allocation5 + $0x268] sm:$0xff]  ;;  %v206_v25 = vld [vmem:[#allocation5 + $0x3e0] sm:$0xff]  ;;  %v205_v29 = vld [vmem:[#allocation5 + $0x3d8] sm:$0xff] }
  0x4e   :  { %816 = vmatprep.subr.mxu1 %v133_v56  ;;  %782 = vmatpush3.msra.mxu0 %v85_v58  ;;  %v191_v23 = vld [vmem:[#allocation5 + $0x368] sm:$0xff]  ;;  %v158_v26 = vld [vmem:[#allocation5 + $0x260] sm:$0xff]  ;;  %v157_v30 = vld [vmem:[#allocation5 + $0x258] sm:$0xff] }
  0x4f   :  { %817 = vmatpush3.msra.mxu1 %v117_v59  ;;  %783 = vmatprep.subr.mxu0 %v100_v60  ;;  %v190_v27 = vld [vmem:[#allocation5 + $0x360] sm:$0xff]  ;;  %v189_v31 = vld [vmem:[#allocation5 + $0x358] sm:$0xff]  ;;  %v172_v32 = vld [vmem:[#allocation5 + $0x2d0] sm:$0xff] }
  0x50   :  { %818 = vmatprep.subr.mxu1 %v132_v61  ;;  %784 = vmatpush3.msra.mxu0 %v84_v63  ;;  %v204_v33 = vld [vmem:[#allocation5 + $0x3d0] sm:$0xff]  ;;  %v171_v36 = vld [vmem:[#allocation5 + $0x2c8] sm:$0xff]  ;;  %v170_v40 = vld [vmem:[#allocation5 + $0x2c0] sm:$0xff] }
  0x51   :  { %819 = vmatpush3.msra.mxu1 %v116_v0  ;;  %785 = vmatprep.subr.mxu0 %v99_v1  ;;  %v156_v34 = vld [vmem:[#allocation5 + $0x250] sm:$0xff]  ;;  %v203_v37 = vld [vmem:[#allocation5 + $0x3c8] sm:$0xff]  ;;  %v202_v41 = vld [vmem:[#allocation5 + $0x3c0] sm:$0xff] }
  0x52   :  { %820 = vmatprep.subr.mxu1 %v131_v2  ;;  %786 = vmatpush3.msra.mxu0 %v83_v4  ;;  %v188_v35 = vld [vmem:[#allocation5 + $0x350] sm:$0xff]  ;;  %v155_v38 = vld [vmem:[#allocation5 + $0x248] sm:$0xff]  ;;  %v154_v42 = vld [vmem:[#allocation5 + $0x240] sm:$0xff] }
  0x53   :  { %821 = vmatpush3.msra.mxu1 %v115_v5  ;;  %787 = vmatprep.subr.mxu0 %v98_v6  ;;  %v187_v39 = vld [vmem:[#allocation5 + $0x348] sm:$0xff]  ;;  %v186_v43 = vld [vmem:[#allocation5 + $0x340] sm:$0xff]  ;;  %v169_v44 = vld [vmem:[#allocation5 + $0x2b8] sm:$0xff] }
  0x54   :  { %822 = vmatprep.subr.mxu1 %v130_v7  ;;  %788 = vmatpush3.msra.mxu0 %v82_v9  ;;  %v201_v45 = vld [vmem:[#allocation5 + $0x3b8] sm:$0xff]  ;;  %v168_v48 = vld [vmem:[#allocation5 + $0x2b0] sm:$0xff]  ;;  %v167_v53 = vld [vmem:[#allocation5 + $0x2a8] sm:$0xff] }
  0x55   :  { %325 = vmatprep.mubr.f32.mxu0 %v234_v8  ;;  %823 = vmatpush3.msra.mxu1 %v114_v10  ;;  %v153_v46 = vld [vmem:[#allocation5 + $0x238] sm:$0xff]  ;;  %v200_v49 = vld [vmem:[#allocation5 + $0x3b0] sm:$0xff]  ;;  %v199_v54 = vld [vmem:[#allocation5 + $0x3a8] sm:$0xff] }
  0x56   :  { %326 = vmatmul.mubr.f32.vlgmr.msra.gmra.mxu0 %v226_v62  ;;  %395 = vmatprep.mubr.f32.mxu1 %v235_v11  ;;  %v185_v47 = vld [vmem:[#allocation5 + $0x338] sm:$0xff]  ;;  %v152_v50 = vld [vmem:[#allocation5 + $0x230] sm:$0xff]  ;;  %v151_v56 = vld [vmem:[#allocation5 + $0x228] sm:$0xff] }
  0x57   :  { %827 = vmatprep.subr.mxu0 %v177_v12  ;;  %862 = vmatprep.subr.mxu1 %v209_v13  ;;  %v184_v52 = vld [vmem:[#allocation5 + $0x330] sm:$0xff]  ;;  %v81_v55 = vld [vmem:[#allocation2 + $0x8] sm:$0xff]  ;;  %v183_v57 = vld [vmem:[#allocation5 + $0x328] sm:$0xff] }
  0x58   :  { %396 = vmatmul.mubr.f32.vlgmr.msra.gmra.mxu1 %v233_v3  ;;  %828 = vmatpush3.msra.mxu0 %v161_v14  ;;  %v166_v58 = vld [vmem:[#allocation5 + $0x2a0] sm:$0xff]  ;;  %v236_v62 = vcombine.high %v81_v55, %v81_v55  ;;  %v165_v63 = vld [vmem:[#allocation5 + $0x298] sm:$0xff]  ;;  %v164_v3 = vld [vmem:[#allocation5 + $0x290] sm:$0xff]  ;;  %v243_v5 = vrot.slane %v81_v55, %v1196_v51 }
  0x59   :  { %863 = vmatpush3.msra.mxu1 %v193_v15  ;;  %829 = vmatprep.subr.mxu0 %v176_v16  ;;  %v198_v59 = vld [vmem:[#allocation5 + $0x3a0] sm:$0xff]  ;;  %v197_v0 = vld [vmem:[#allocation5 + $0x398] sm:$0xff]  ;;  %v196_v4 = vld [vmem:[#allocation5 + $0x390] sm:$0xff] }
  0x5a   :  { %864 = vmatprep.subr.mxu1 %v208_v17  ;;  %830 = vmatpush3.msra.mxu0 %v160_v18  ;;  %v150_v60 = vld [vmem:[#allocation5 + $0x220] sm:$0xff]  ;;  %v149_v1 = vld [vmem:[#allocation5 + $0x218] sm:$0xff]  ;;  %v148_v6 = vld [vmem:[#allocation5 + $0x210] sm:$0xff]  ;;  %v250_v8 = vrot.slane %v236_v62, %v1196_v51  ;;  %v251_v15 = vcombine.high %v243_v5, %v243_v5 }
  0x5b   :  { %865 = vmatpush3.msra.mxu1 %v192_v19  ;;  %831 = vmatprep.subr.mxu0 %v175_v20  ;;  %v182_v61 = vld [vmem:[#allocation5 + $0x320] sm:$0xff]  ;;  %v181_v2 = vld [vmem:[#allocation5 + $0x318] sm:$0xff]  ;;  %v180_v7 = vld [vmem:[#allocation5 + $0x310] sm:$0xff]  ;;  %v1132_v19 = vmov 0.0  }
  0x5c   :  { %866 = vmatprep.subr.mxu1 %v207_v21  ;;  %832 = vmatpush3.msra.mxu0 %v159_v22  ;;  %v163_v9 = vld [vmem:[#allocation5 + $0x288] sm:$0xff]  ;;  %v162_v13 = vld [vmem:[#allocation5 + $0x280] sm:$0xff]  ;;  %v252_v17 = vcombine.high %v250_v8, %v250_v8  ;;  %v557_v18 = vld [vmem:[#allocation7 + $0x78] sm:$0xff] }
  0x5d   :  { %867 = vmatpush3.msra.mxu1 %v191_v23  ;;  %833 = vmatprep.subr.mxu0 %v174_v24  ;;  %v195_v10 = vld [vmem:[#allocation5 + $0x388] sm:$0xff]  ;;  %v194_v14 = vld [vmem:[#allocation5 + $0x380] sm:$0xff]  ;;  %v556_v20 = vld [vmem:[#allocation7 + $0x70] sm:$0xff] }
  0x5e   :  { %868 = vmatprep.subr.mxu1 %v206_v25  ;;  %834 = vmatpush3.msra.mxu0 %v158_v26  ;;  %v147_v11 = vld [vmem:[#allocation5 + $0x208] sm:$0xff]  ;;  %v146_v16 = vld [vmem:[#allocation5 + $0x200] sm:$0xff]  ;;  %v553_v23 = vld [vmem:[#allocation7 + $0x58] sm:$0xff] }
  0x5f   :  { %869 = vmatpush3.msra.mxu1 %v190_v27  ;;  %835 = vmatprep.subr.mxu0 %v173_v28  ;;  %v179_v12 = vld [vmem:[#allocation5 + $0x308] sm:$0xff]  ;;  %v178_v51 = vld [vmem:[#allocation5 + $0x300] sm:$0xff]  ;;  %v552_v24 = vld [vmem:[#allocation7 + $0x50] sm:$0xff] }
  0x60   :  { %870 = vmatprep.subr.mxu1 %v205_v29  ;;  %836 = vmatpush3.msra.mxu0 %v157_v30  ;;  %v555_v21 = vld [vmem:[#allocation7 + $0x68] sm:$0xff]  ;;  %v554_v22 = vld [vmem:[#allocation7 + $0x60] sm:$0xff]  ;;  %v549_v27 = vld [vmem:[#allocation7 + $0x38] sm:$0xff] }
  0x61   :  { %871 = vmatpush3.msra.mxu1 %v189_v31  ;;  %837 = vmatprep.subr.mxu0 %v172_v32  ;;  %v551_v25 = vld [vmem:[#allocation7 + $0x48] sm:$0xff]  ;;  %v550_v26 = vld [vmem:[#allocation7 + $0x40] sm:$0xff]  ;;  %v548_v28 = vld [vmem:[#allocation7 + $0x30] sm:$0xff] }
  0x62   :  { %872 = vmatprep.subr.mxu1 %v204_v33  ;;  %838 = vmatpush3.msra.mxu0 %v156_v34  ;;  %v547_v29 = vld [vmem:[#allocation7 + $0x28] sm:$0xff]  ;;  %v546_v30 = vld [vmem:[#allocation7 + $0x20] sm:$0xff]  ;;  %v545_v31 = vld [vmem:[#allocation7 + $0x18] sm:$0xff] }
  0x63   :  { %873 = vmatpush3.msra.mxu1 %v188_v35  ;;  %839 = vmatprep.subr.mxu0 %v171_v36  ;;  %v544_v32 = vld [vmem:[#allocation7 + $0x10] sm:$0xff]  ;;  %v543_v33 = vld [vmem:[#allocation7 + $0x8] sm:$0xff]  ;;  %v542_v34 = vld [vmem:[#allocation7] sm:$0xff] }
  0x64   :  { %874 = vmatprep.subr.mxu1 %v203_v37  ;;  %840 = vmatpush3.msra.mxu0 %v155_v38  ;;  %v651_v35 = vld [vmem:[#allocation8 + $0x78] sm:$0xff]  ;;  %v650_v36 = vld [vmem:[#allocation8 + $0x70] sm:$0xff]  ;;  %v649_v37 = vld [vmem:[#allocation8 + $0x68] sm:$0xff] }
  0x65   :  { %875 = vmatpush3.msra.mxu1 %v187_v39  ;;  %841 = vmatprep.subr.mxu0 %v170_v40  ;;  %v648_v38 = vld [vmem:[#allocation8 + $0x60] sm:$0xff]  ;;  %v647_v39 = vld [vmem:[#allocation8 + $0x58] sm:$0xff]  ;;  %v646_v40 = vld [vmem:[#allocation8 + $0x50] sm:$0xff] }
  0x66   :  { %876 = vmatprep.subr.mxu1 %v202_v41  ;;  %842 = vmatpush3.msra.mxu0 %v154_v42  ;;  %v645_v41 = vld [vmem:[#allocation8 + $0x48] sm:$0xff]  ;;  %v644_v42 = vld [vmem:[#allocation8 + $0x40] sm:$0xff] }
  0x67   :  { %877 = vmatpush3.msra.mxu1 %v186_v43  ;;  %843 = vmatprep.subr.mxu0 %v169_v44  ;;  %v643_v43 = vld [vmem:[#allocation8 + $0x38] sm:$0xff]  ;;  %v642_v44 = vld [vmem:[#allocation8 + $0x30] sm:$0xff] }
  0x68   :  { %878 = vmatprep.subr.mxu1 %v201_v45  ;;  %844 = vmatpush3.msra.mxu0 %v153_v46  ;;  %v641_v45 = vld [vmem:[#allocation8 + $0x28] sm:$0xff]  ;;  %v640_v46 = vld [vmem:[#allocation8 + $0x20] sm:$0xff] }
  0x69   :  { %879 = vmatpush3.msra.mxu1 %v185_v47  ;;  %845 = vmatprep.subr.mxu0 %v168_v48  ;;  %v639_v47 = vld [vmem:[#allocation8 + $0x18] sm:$0xff] }
  0x6a   :  { %880 = vmatprep.subr.mxu1 %v200_v49  ;;  %846 = vmatpush3.msra.mxu0 %v152_v50 }
  0x6b   :  { %881 = vmatpush3.msra.mxu1 %v184_v52  ;;  %847 = vmatprep.subr.mxu0 %v167_v53  ;;  %v753_v53 = vld [vmem:[%s1250_s2] ss:$0 sm:$0xff] }
  0x6c   :  { %882 = vmatprep.subr.mxu1 %v199_v54  ;;  %848 = vmatpush3.msra.mxu0 %v151_v56 }
  0x6d   :  { %883 = vmatpush3.msra.mxu1 %v183_v57  ;;  %849 = vmatprep.subr.mxu0 %v166_v58 }
  0x6e   :  { %884 = vmatprep.subr.mxu1 %v198_v59  ;;  %850 = vmatpush3.msra.mxu0 %v150_v60 }
  0x6f   :  { %885 = vmatpush3.msra.mxu1 %v182_v61  ;;  %851 = vmatprep.subr.mxu0 %v165_v63 }
  0x70   :  { %886 = vmatprep.subr.mxu1 %v197_v0  ;;  %852 = vmatpush3.msra.mxu0 %v149_v1 }
  0x71   :  { %887 = vmatpush3.msra.mxu1 %v181_v2  ;;  %853 = vmatprep.subr.mxu0 %v164_v3  ;;  %v638_v3 = vld [vmem:[#allocation8 + $0x10] sm:$0xff] }
  0x72   :  { %888 = vmatprep.subr.mxu1 %v196_v4  ;;  %854 = vmatpush3.msra.mxu0 %v148_v6  ;;  %v637_v4 = vld [vmem:[#allocation8 + $0x8] sm:$0xff]  ;;  %v754_v6 = vld [vmem:[%s1252_s4] ss:$0 sm:$0xff]  ;;  %s1097_s4 = scalar_lea.vmem %s743_s25, 32 }
  0x73   :  { %889 = vmatpush3.msra.mxu1 %v180_v7  ;;  %855 = vmatprep.subr.mxu0 %v163_v9  ;;  %p1098_p6 = scmp.ne.s32.totalorder %s743_s25, %s1097_s4  ;;  %p1103_p8 = scmp.lt.s32.totalorder %s1097_s4, %s1097_s4 }
  0x74   :  { %890 = vmatprep.subr.mxu1 %v195_v10  ;;  %856 = vmatpush3.msra.mxu0 %v147_v11  ;;  %v755_v11 = vld [vmem:[%s1254_s6] ss:$0 sm:$0xff] }
  0x75   :  { %891 = vmatpush3.msra.mxu1 %v179_v12  ;;  %857 = vmatprep.subr.mxu0 %v162_v13  ;;  %p1104_p9 = por %p1103_p8, %p1102_p7 }
  0x76   :  { %892 = vmatprep.subr.mxu1 %v194_v14  ;;  %858 = vmatpush3.msra.mxu0 %v146_v16 }
  0x77   :  { %465 = vmatprep.mubr.f32.mxu0 %v251_v15  ;;  %893 = vmatpush3.msra.mxu1 %v178_v51  ;;  %p1105_p10 = pnand %p1104_p9, %p1098_p6 }
  0x78   :  { %535 = vmatprep.mubr.f32.mxu1 %v252_v17  ;;  %466 = vmatmul.mubr.f32.vlgmr.msra.gmra.mxu0 %v243_v5  ;;  %v636_v5 = vld [vmem:[#allocation8] sm:$0xff] }
  0x79   :  { %536 = vmatmul.mubr.f32.vlgmr.msra.gmra.mxu1 %v250_v8  ;;  %931 = vmatprep.subr.mxu0 %v1132_v19 }
  0x7a   :  { %966 = vmatprep.subr.mxu1 %v1132_v19  ;;  %932 = vmatpush3.msra.mxu0 %v557_v18 }
  0x7b   :  { %933 = vmatprep.subr.mxu0 %v1132_v19  ;;  %963 = vmatprep.mubr.msk.f32.mxu0 %vm1133_vm0, %v1132_v19 }
  0x7c   :  { %934 = vmatpush3.msra.mxu0 %v556_v20  ;;  %998 = vmatprep.mubr.msk.f32.mxu1 %vm1133_vm0, %v1132_v19 }
  0x7d   :  { %935 = vmatprep.subr.mxu0 %v1132_v19  ;;  %967 = vmatpush3.msra.mxu1 %v651_v35 }
  0x7e   :  { %936 = vmatpush3.msra.mxu0 %v555_v21  ;;  %968 = vmatprep.subr.mxu1 %v1132_v19 }
  0x7f   :  { %937 = vmatprep.subr.mxu0 %v1132_v19  ;;  %969 = vmatpush3.msra.mxu1 %v650_v36 }
  0x80   :  { %938 = vmatpush3.msra.mxu0 %v554_v22  ;;  %970 = vmatprep.subr.mxu1 %v1132_v19 }
  0x81   :  { %939 = vmatprep.subr.mxu0 %v1132_v19  ;;  %971 = vmatpush3.msra.mxu1 %v649_v37 }
  0x82   :  { %940 = vmatpush3.msra.mxu0 %v553_v23  ;;  %972 = vmatprep.subr.mxu1 %v1132_v19 }
  0x83   :  { %941 = vmatprep.subr.mxu0 %v1132_v19  ;;  %973 = vmatpush3.msra.mxu1 %v648_v38 }
  0x84   :  { %942 = vmatpush3.msra.mxu0 %v552_v24  ;;  %974 = vmatprep.subr.mxu1 %v1132_v19 }
  0x85   :  { %943 = vmatprep.subr.mxu0 %v1132_v19  ;;  %975 = vmatpush3.msra.mxu1 %v647_v39 }
  0x86   :  { %944 = vmatpush3.msra.mxu0 %v551_v25  ;;  %976 = vmatprep.subr.mxu1 %v1132_v19 }
  0x87   :  { %945 = vmatprep.subr.mxu0 %v1132_v19  ;;  %977 = vmatpush3.msra.mxu1 %v646_v40 }
  0x88   :  { %946 = vmatpush3.msra.mxu0 %v550_v26  ;;  %978 = vmatprep.subr.mxu1 %v1132_v19 }
  0x89   :  { %947 = vmatprep.subr.mxu0 %v1132_v19  ;;  %979 = vmatpush3.msra.mxu1 %v645_v41 }
  0x8a   :  { %948 = vmatpush3.msra.mxu0 %v549_v27  ;;  %980 = vmatprep.subr.mxu1 %v1132_v19 }
  0x8b   :  { %949 = vmatprep.subr.mxu0 %v1132_v19  ;;  %981 = vmatpush3.msra.mxu1 %v644_v42 }
  0x8c   :  { %950 = vmatpush3.msra.mxu0 %v548_v28  ;;  %982 = vmatprep.subr.mxu1 %v1132_v19 }
  0x8d   :  { %951 = vmatprep.subr.mxu0 %v1132_v19  ;;  %983 = vmatpush3.msra.mxu1 %v643_v43 }
  0x8e   :  { %952 = vmatpush3.msra.mxu0 %v547_v29  ;;  %984 = vmatprep.subr.mxu1 %v1132_v19 }
  0x8f   :  { %953 = vmatprep.subr.mxu0 %v1132_v19  ;;  %985 = vmatpush3.msra.mxu1 %v642_v44 }
  0x90   :  { %954 = vmatpush3.msra.mxu0 %v546_v30  ;;  %986 = vmatprep.subr.mxu1 %v1132_v19 }
  0x91   :  { %955 = vmatprep.subr.mxu0 %v1132_v19  ;;  %987 = vmatpush3.msra.mxu1 %v641_v45 }
  0x92   :  { %956 = vmatpush3.msra.mxu0 %v545_v31  ;;  %988 = vmatprep.subr.mxu1 %v1132_v19 }
  0x93   :  { %957 = vmatprep.subr.mxu0 %v1132_v19  ;;  %989 = vmatpush3.msra.mxu1 %v640_v46 }
  0x94   :  { %958 = vmatpush3.msra.mxu0 %v544_v32  ;;  %990 = vmatprep.subr.mxu1 %v1132_v19 }
  0x95   :  { %959 = vmatprep.subr.mxu0 %v1132_v19  ;;  %991 = vmatpush3.msra.mxu1 %v639_v47 }
  0x96   :  { %960 = vmatpush3.msra.mxu0 %v543_v33  ;;  %992 = vmatprep.subr.mxu1 %v1132_v19 }
  0x97   :  { %961 = vmatprep.subr.mxu0 %v1132_v19  ;;  %993 = vmatpush3.msra.mxu1 %v638_v3 }
  0x98   :  { %962 = vmatpush3.msra.mxu0 %v542_v34  ;;  %994 = vmatprep.subr.mxu1 %v1132_v19 }
  0x99   :  { %995 = vmatpush3.msra.mxu1 %v637_v4 }
  0x9a   :  { %996 = vmatprep.subr.mxu1 %v1132_v19 }
  0x9b   :  { %997 = vmatpush3.msra.mxu1 %v636_v5 }
 0x116   :  { %v789_v48 = vpop.f32.mrf.mxu0 }
 0x118   :  { %v824_v49 = vpop.f32.mrf.mxu1  ;;  %v790_v50 = vpop.f32.mrf.mxu0 }
 0x119   :  { %v791_v52 = vadd.f32 %v790_v50, %v789_v48 }
 0x11a   :  { %v825_v54 = vpop.f32.mrf.mxu1 }
 0x11b   :  { %v328_v55 = vadd.f32 %v791_v52, %v753_v53  ;;  %v826_v56 = vadd.f32 %v825_v54, %v824_v49 }
 0x11d   :  { %v398_v61 = vadd.f32 %v826_v56, %v328_v55 }
 0x138   :  { %v859_v57 = vpop.f32.mrf.mxu0 }
 0x139   :  { %v894_v58 = vpop.f32.mrf.mxu1 }
 0x13a   :  { %v860_v59 = vpop.f32.mrf.mxu0 }
 0x13b   :  { %v895_v60 = vpop.f32.mrf.mxu1  ;;  %v861_v62 = vadd.f32 %v860_v59, %v859_v57 }
 0x13c   :  { %v896_v0 = vadd.f32 %v895_v60, %v894_v58 }
 0x13d   :  { %v468_v63 = vadd.f32 %v861_v62, %v398_v61 }
 0x13f   :  { %v538_v1 = vadd.f32 %v896_v0, %v468_v63 }
 0x141   :  { %v541_v2 = vmax.f32 %v538_v1, 0.0 }
 0x143   :  { %964 = vmatmul.mubr.f32.vlgmr.msra.gmra.mxu0 %v541_v2 }
 0x203   :  { %v631_v7 = vpop.f32.mrf.mxu0 }
 0x204   :  { %v632_v8 = vadd.f32 %v754_v6, %v631_v7 }
 0x205   :  { %v965_v9 = vpop.f32.mrf.mxu0 }
 0x206   :  { %v635_v10 = vmax.f32 %v632_v8, 0.0 }
 0x208   :  { %999 = vmatmul.mubr.f32.vlgmr.msra.gmra.mxu1 %v635_v10 }
 0x2c8   :  { %v725_v12 = vpop.f32.mrf.mxu1 }
 0x2c9   :  { %v726_v13 = vadd.f32 %v755_v11, %v725_v12 }
 0x2ca   :  { %v1000_v14 = vpop.f32.mrf.mxu1 }
 0x2cb   :  { %v756_v15 = vmul.f32 -1.442695, %v726_v13 }
 0x2cd   :  { %1013 = vpow2.f32 %v756_v15 }
 0x2da   :  { %v1014_v16 = vpop.eup %1013 }
 0x2db   :  { %v732_v17 = vadd.f32 1.0, %v1014_v16 }
 0x2dd   :  { %1015 = vrcp.f32 %v732_v17 }
 0x2ea   :  { %v1016_v51 = vpop.eup %1015 }
 0x2eb   :  { %735 = vst [vmem:[#allocation10] sm:$0x3] %v1016_v51 }
 0x2ec   :  { %1108 = shalt.err (!%p1105_p10)
}
 0x2ed   :  { %745 = dma.vmem_to_hbm [thread:$0]  %s743_s25, 32, %s1255_s7, [#allocation4]  }
 0x2ee   :  { %1123 = dma.done.wait [#allocation4], 32  }
 0x2ef   :  { %1124 = vsyncadd [#allocation4], 4294967264 }
 0x2f0   :  { %749 = vsyncpa [#allocation3], 1 }
 0x2f1   :  { %750 = vsyncpa [#allocation6], 1 }
 0x2f2   :  { %751 = vsyncpa [#allocation9], 1 }
 0x2f3   :  { %752 = vsyncpa [#allocation4], 1 }

</bundles_post_ra>
